<compile_context>
chip_gen: v6e
topology: v6e:2x2x1
jax: 0.10.0
libtpu: 0.0.40
codegen_flags: <defaults>
</compile_context>

<pallas_src>
import functools

import jax
import jax.numpy as jnp
from jax import lax
from jax.experimental import pallas as pl
from jax.experimental.pallas import tpu as pltpu

ROW_TILE = 512   # default row tile (rows per grid step); shrinks for tiny inputs
SEG_TILE = 128   # default segment tile for the scatter-sum output axis
BN_EPS = 1e-5


# ---------------------------------------------------------------------------
# small helpers
# ---------------------------------------------------------------------------
def _round_up(x, m):
    return ((x + m - 1) // m) * m


def _pad_to(x, shape):
    pads = [(0, t - s) for s, t in zip(x.shape, shape)]
    return jnp.pad(x, pads)


def _pick_row_tile(n, target=ROW_TILE):
    return min(target, _round_up(max(n, 1), 8))


def _wspec(arr):
    """Full-array (untiled) BlockSpec for small weights, resident across the grid."""
    return pl.BlockSpec(arr.shape, lambda *_: (0, 0))


# ---------------------------------------------------------------------------
# Pallas kernels
# ---------------------------------------------------------------------------
def _mlp_fused_kernel(a_ref, s_ref, w1a_ref, w1s_ref, b1_ref, w2_ref, b2_ref, o_ref):
    """Linear -> ReLU -> Linear (no batch norm), one row tile per grid step."""
    h = jnp.dot(a_ref[...], w1a_ref[...], preferred_element_type=jnp.float32)
    h = h + s_ref[...] * w1s_ref[...]          # (rt,1)*(1,H) broadcast, VPU
    h = h + b1_ref[...]
    h = jnp.maximum(h, 0.0)
    o_ref[...] = jnp.dot(h.astype(jnp.bfloat16), w2_ref[...],
                         preferred_element_type=jnp.float32) + b2_ref[...]


def _make_hidden_stats_kernel(has_b, has_s, n_real):
    """Pass A of a BN MLP: hidden pre-activations + global sum / sumsq."""

    def kernel(*refs):
        refs = list(refs)
        a_ref = refs.pop(0)
        b_ref = refs.pop(0) if has_b else None
        s_ref = refs.pop(0) if has_s else None
        w1a_ref = refs.pop(0)
        w1b_ref = refs.pop(0) if has_b else None
        w1s_ref = refs.pop(0) if has_s else None
        b1_ref = refs.pop(0)
        h_ref, sum_ref, ssq_ref = refs

        i = pl.program_id(0)
        row_tile = a_ref.shape[0]

        @pl.when(i == 0)
        def _():
            sum_ref[...] = jnp.zeros_like(sum_ref)
            ssq_ref[...] = jnp.zeros_like(ssq_ref)

        h = jnp.dot(a_ref[...], w1a_ref[...], preferred_element_type=jnp.float32)
        if has_b:
            h = h + jnp.dot(b_ref[...], w1b_ref[...],
                            preferred_element_type=jnp.float32)
        if has_s:
            h = h + s_ref[...] * w1s_ref[...]
        h = h + b1_ref[...]

        # mask padded rows so they pollute neither h nor the batch statistics
        row_ids = i * row_tile + lax.broadcasted_iota(jnp.int32, h.shape, 0)
        h = jnp.where(row_ids < n_real, h, 0.0)

        h_ref[...] = h
        sum_ref[...] += jnp.sum(h, axis=0, keepdims=True)
        ssq_ref[...] += jnp.sum(h * h, axis=0, keepdims=True)

    return kernel


def _norm_out_kernel(h_ref, scale_ref, shift_ref, w2_ref, b2_ref, o_ref):
    """Pass B of a BN MLP: folded BatchNorm -> ReLU -> second Linear."""
    y = jnp.maximum(h_ref[...] * scale_ref[...] + shift_ref[...], 0.0)
    o_ref[...] = jnp.dot(y.astype(jnp.bfloat16), w2_ref[...],
                         preferred_element_type=jnp.float32) + b2_ref[...]


def _segsum_kernel(gi_ref, x_ref, o_ref):
    """Segment-sum: in-register one-hot (seg_tile, row_tile) matmul, accumulated
    over the row-tile ("arbitrary") grid axis."""
    seg_tile = o_ref.shape[0]
    r = pl.program_id(1)

    @pl.when(r == 0)
    def _():
        o_ref[...] = jnp.zeros_like(o_ref)

    gi = gi_ref[pl.ds(r, 1), :]                                    # (1, row_tile)
    seg_ids = pl.program_id(0) * seg_tile + lax.broadcasted_iota(
        jnp.int32, (seg_tile, gi.shape[1]), 0)
    onehot = (gi == seg_ids).astype(jnp.float32)                   # (seg_tile, row_tile)
    o_ref[...] += jnp.dot(onehot, x_ref[...], preferred_element_type=jnp.float32)


# ---------------------------------------------------------------------------
# Pallas wrappers
# ---------------------------------------------------------------------------
def mlp_no_bn(a, s, p):
    """2-layer MLP without batch norm: pieces a (n, d_pad) and scalar column s."""
    n, d_pad = a.shape
    d_out = p["w2"].shape[1]
    rt = _pick_row_tile(n)
    rows_pad = _round_up(n, rt)
    nt = rows_pad // rt

    a_p = jnp.pad(a, ((0, rows_pad - n), (0, 0))).astype(jnp.bfloat16)
    s_p = jnp.pad(s.reshape(-1, 1).astype(jnp.float32), ((0, rows_pad - n), (0, 0)))

    out = pl.pallas_call(
        _mlp_fused_kernel,
        out_shape=jax.ShapeDtypeStruct((rows_pad, d_out), jnp.float32),
        grid=(nt,),
        in_specs=[
            pl.BlockSpec((rt, d_pad), lambda i: (i, 0)),
            pl.BlockSpec((rt, 1), lambda i: (i, 0)),
            _wspec(p["w1a"]), _wspec(p["w1s"]), _wspec(p["b1"]),
            _wspec(p["w2"]), _wspec(p["b2"]),
        ],
        out_specs=pl.BlockSpec((rt, d_out), lambda i: (i, 0)),
        compiler_params=pltpu.CompilerParams(dimension_semantics=("parallel",)),
    )(a_p, s_p, p["w1a"], p["w1s"], p["b1"], p["w2"], p["b2"])
    return out[:n]


def mlp_bn(a, b, s, p):
    """2-layer MLP with BatchNorm1d (training-mode batch stats): two row-tiled
    Pallas passes so the cross-tile statistics stay exact."""
    n, d_pad = a.shape
    H = p["w1a"].shape[1]
    d_out = p["w2"].shape[1]
    has_b = b is not None
    has_s = s is not None

    rt = _pick_row_tile(n)
    rows_pad = _round_up(n, rt)
    nt = rows_pad // rt

    ins = [jnp.pad(a, ((0, rows_pad - n), (0, 0))).astype(jnp.bfloat16)]
    in_specs = [pl.BlockSpec((rt, d_pad), lambda i: (i, 0))]
    if has_b:
        ins.append(jnp.pad(b, ((0, rows_pad - n), (0, 0))).astype(jnp.bfloat16))
        in_specs.append(pl.BlockSpec((rt, d_pad), lambda i: (i, 0)))
    if has_s:
        ins.append(jnp.pad(s.reshape(-1, 1).astype(jnp.float32),
                           ((0, rows_pad - n), (0, 0))))
        in_specs.append(pl.BlockSpec((rt, 1), lambda i: (i, 0)))

    w_ins = [p["w1a"]]
    if has_b:
        w_ins.append(p["w1b"])
    if has_s:
        w_ins.append(p["w1s"])
    w_ins.append(p["b1"])
    w_specs = [_wspec(w) for w in w_ins]

    # Pass A: hidden pre-activations + batch statistics (reduction over row tiles).
    h, hsum, hssq = pl.pallas_call(
        _make_hidden_stats_kernel(has_b, has_s, n),
        out_shape=(jax.ShapeDtypeStruct((rows_pad, H), jnp.float32),
                   jax.ShapeDtypeStruct((1, H), jnp.float32),
                   jax.ShapeDtypeStruct((1, H), jnp.float32)),
        grid=(nt,),
        in_specs=in_specs + w_specs,
        out_specs=(pl.BlockSpec((rt, H), lambda i: (i, 0)),
                   pl.BlockSpec((1, H), lambda i: (0, 0)),
                   pl.BlockSpec((1, H), lambda i: (0, 0))),
        compiler_params=pltpu.CompilerParams(dimension_semantics=("arbitrary",)),
    )(*ins, *w_ins)

    # Fold PyTorch BatchNorm1d training-mode stats (biased var, eps=1e-5) into
    # a scale/shift pair (tiny (1, H) math, done in plain JAX).
    mean = hsum / n
    var = jnp.maximum(hssq / n - mean * mean, 0.0)
    scale = p["gamma"] * lax.rsqrt(var + BN_EPS)
    shift = p["beta"] - mean * scale

    # Pass B: normalize -> ReLU -> second Linear.
    out = pl.pallas_call(
        _norm_out_kernel,
        out_shape=jax.ShapeDtypeStruct((rows_pad, d_out), jnp.float32),
        grid=(nt,),
        in_specs=[pl.BlockSpec((rt, H), lambda i: (i, 0)),
                  _wspec(scale), _wspec(shift), _wspec(p["w2"]), _wspec(p["b2"])],
        out_specs=pl.BlockSpec((rt, d_out), lambda i: (i, 0)),
        compiler_params=pltpu.CompilerParams(dimension_semantics=("parallel",)),
    )(h, scale, shift, p["w2"], p["b2"])
    return out[:n]


def segment_sum(x, group_index, num_segments):
    """scatter(x, group_index, dim=0, dim_size=num_segments, reduce='sum').
    group_index is produced by count_to_group_index (sorted/contiguous), but the
    one-hot reduction is correct for arbitrary indices as well."""
    n, d_pad = x.shape
    rt = _pick_row_tile(n)
    rows_pad = _round_up(n, rt)
    st = min(SEG_TILE, _round_up(max(num_segments, 1), 8))
    segs_pad = _round_up(num_segments, st)
    num_rt = rows_pad // rt
    num_st = segs_pad // st

    x_p = jnp.pad(x, ((0, rows_pad - n), (0, 0)))
    gi_p = jnp.pad(group_index.astype(jnp.int32), (0, rows_pad - n),
                   constant_values=-1)                 # sentinel: padded rows hit no segment
    gi2 = gi_p.reshape(num_rt, rt)                     # group ids laid out along lanes

    out = pl.pallas_call(
        _segsum_kernel,
        out_shape=jax.ShapeDtypeStruct((segs_pad, d_pad), jnp.float32),
        grid=(num_st, num_rt),
        in_specs=[pl.BlockSpec((num_rt, rt), lambda s, r: (0, 0)),
                  pl.BlockSpec((rt, d_pad), lambda s, r: (r, 0))],
        out_specs=pl.BlockSpec((st, d_pad), lambda s, r: (s, 0)),
        compiler_params=pltpu.CompilerParams(
            dimension_semantics=("parallel", "arbitrary")),
    )(gi2, x_p)
    return out[:num_segments]


# ---------------------------------------------------------------------------
# Parameter init (mirrors nn.Linear default init at the REAL fan-in, then
# splits W1 into per-piece row blocks and zero-pads everything to lane-dense
# 128-multiples; matmul weights stored in bf16).
# ---------------------------------------------------------------------------
def _init_linear(key, fan_in, fan_out):
    k1, k2 = jax.random.split(key)
    bound = 1.0 / float(fan_in) ** 0.5
    w = jax.random.uniform(k1, (fan_in, fan_out), jnp.float32, -bound, bound)
    b = jax.random.uniform(k2, (fan_out,), jnp.float32, -bound, bound)
    return w, b


def _init_mlp(key, in_pieces, d, hidden, has_scalar, batch_norm, d_pad):
    fan_in = in_pieces * d + (1 if has_scalar else 0)
    k1, k2 = jax.random.split(key)
    w1, b1 = _init_linear(k1, fan_in, hidden)
    w2, b2 = _init_linear(k2, hidden, d)
    H_pad = _round_up(hidden, 128)

    p = {
        "w1a": _pad_to(w1[:d], (d_pad, H_pad)).astype(jnp.bfloat16),
        "b1": _pad_to(b1.reshape(1, -1), (1, H_pad)),
        "w2": _pad_to(w2, (H_pad, d_pad)).astype(jnp.bfloat16),
        "b2": _pad_to(b2.reshape(1, -1), (1, d_pad)),
    }
    if in_pieces == 2:
        p["w1b"] = _pad_to(w1[d:2 * d], (d_pad, H_pad)).astype(jnp.bfloat16)
    if has_scalar:
        p["w1s"] = _pad_to(w1[in_pieces * d:], (1, H_pad))
    if batch_norm:
        p["gamma"] = _pad_to(jnp.ones((1, hidden), jnp.float32), (1, H_pad))
        p["beta"] = jnp.zeros((1, H_pad), jnp.float32)
    return p


def init_gd_transform_params(key, emb_dim):
    d_pad = _round_up(emb_dim, 128)
    k1, k2, k3 = jax.random.split(key, 3)
    return {
        "d_pad": d_pad,
        # MLPLayers(2, [d+1, 2d, d], batch_norm=False)
        "gd_deg": _init_mlp(k1, 1, emb_dim, 2 * emb_dim, True, False, d_pad),
        # MLPLayers(2, [2d+1, 4d, d], batch_norm=True)
        "nei_gd": _init_mlp(k2, 2, emb_dim, 4 * emb_dim, True, True, d_pad),
        # MLPLayers(2, [2d, 4d, d], batch_norm=True)
        "node_nei": _init_mlp(k3, 2, emb_dim, 4 * emb_dim, False, True, d_pad),
    }


# ---------------------------------------------------------------------------
# GDTransform.forward
# ---------------------------------------------------------------------------
def count_to_group_index(count, total):
    return jnp.repeat(jnp.arange(count.shape[0], dtype=jnp.int32), count,
                      total_repeat_length=total)


def gd_transform_forward(params, repr_, nodes, neighbors, neighbor_count, dist,
                         gd, gd_count, gd_deg):
    emb_dim = repr_.shape[1]
    d_pad = params["d_pad"]
    E = neighbors.shape[0]
    G = gd.shape[0]
    M = nodes.shape[0]

    # keep the whole pipeline lane-dense: pad the embedding dim to 128 once
    repr_pad = jnp.pad(repr_, ((0, 0), (0, d_pad - emb_dim)))

    # TODO(synk): data-dependent row gathers (repr[idx]) stay in JAX glue.
    gd_repr = repr_pad[gd]                          # (G, d_pad)
    neighbors_repr = repr_pad[neighbors]            # (E, d_pad)
    nodes_repr = repr_pad[nodes]                    # (M, d_pad)

    # geodesic-level MLP (gd_deg=True path, no batch norm)
    combined_gd = mlp_no_bn(gd_repr, gd_deg, params["gd_deg"])          # (G, d_pad)

    # scatter-sum gd -> neighbors
    gd_group = count_to_group_index(gd_count, G)
    combined_gd = segment_sum(combined_gd, gd_group, E)                 # (E, d_pad)

    # neighbor-level MLP (batch norm)
    combined = mlp_bn(combined_gd, neighbors_repr, dist, params["nei_gd"])   # (E, d_pad)

    # scatter-sum neighbors -> nodes
    nei_group = count_to_group_index(neighbor_count, E)
    combined = segment_sum(combined, nei_group, M)                      # (M, d_pad)

    # node-level MLP (batch norm)
    out = mlp_bn(combined, nodes_repr, None, params["node_nei"])        # (M, d_pad)
    return out[:, :emb_dim]


# ---------------------------------------------------------------------------
# Demo
# ---------------------------------------------------------------------------
if __name__ == "__main__":
    key = jax.random.PRNGKey(0)
    emb_dim = 32
    N = 20   # total nodes with representations
    M = 4    # nodes of interest

    k_repr, k_dist, k_deg, k_params = jax.random.split(key, 4)

    repr_ = jax.random.normal(k_repr, (N, emb_dim), jnp.float32)
    nodes = jnp.array([0, 3, 7, 11], dtype=jnp.int32)                    # (M,)
    neighbor_count = jnp.array([2, 3, 1, 2], dtype=jnp.int32)            # sum = E = 8
    neighbors = jnp.array([1, 2, 4, 5, 6, 8, 9, 10], dtype=jnp.int32)    # (E,)
    E = int(neighbors.shape[0])
    dist = jax.random.uniform(k_dist, (E,), jnp.float32, 1.0, 3.0)
    gd_count = jnp.array([1, 2, 1, 3, 2, 1, 2, 2], dtype=jnp.int32)      # sum = G = 14
    gd = jnp.array([12, 13, 14, 15, 16, 17, 18, 19, 1, 2, 3, 4, 5, 6],
                   dtype=jnp.int32)                                      # (G,)
    G = int(gd.shape[0])
    gd_deg = jax.random.uniform(k_deg, (G,), jnp.float32, 1.0, 5.0)

    params = init_gd_transform_params(k_params, emb_dim)

    out = gd_transform_forward(
        params, repr_, nodes, neighbors, neighbor_count, dist, gd, gd_count, gd_deg
    )
    out = jax.block_until_ready(out)
    assert out.shape == (M, emb_dim) and out.dtype == jnp.float32
    print("KERNEL_OK")
</pallas_src>

<mosaic_0001>
module attributes {stable_mosaic.version = 11 : i64} {
  func.func @_mlp_fused_kernel(%arg0: i32, %arg1: memref<16x128xbf16, #tpu.memory_space<vmem>>, %arg2: memref<16x1xf32, #tpu.memory_space<vmem>>, %arg3: memref<128x128xbf16, #tpu.memory_space<vmem>>, %arg4: memref<1x128xf32, #tpu.memory_space<vmem>>, %arg5: memref<1x128xf32, #tpu.memory_space<vmem>>, %arg6: memref<128x128xbf16, #tpu.memory_space<vmem>>, %arg7: memref<1x128xf32, #tpu.memory_space<vmem>>, %arg8: memref<16x128xf32, #tpu.memory_space<vmem>>) attributes {dimension_semantics = [#tpu.dimension_semantics<parallel>], iteration_bounds = array<i64: 1>, scalar_prefetch = 0 : i64, scratch_operands = 0 : i64, tpu.core_type = #tpu.core_type<tc>, window_params = [{transform_indices = @transform_0, window_bounds = array<i64: 16, 128>}, {transform_indices = @transform_1, window_bounds = array<i64: 16, 1>}, {pipeline_mode = #tpu.pipeline_mode<synchronous>, transform_indices = @transform_2, window_bounds = array<i64: 128, 128>}, {pipeline_mode = #tpu.pipeline_mode<synchronous>, transform_indices = @transform_3, window_bounds = array<i64: 1, 128>}, {pipeline_mode = #tpu.pipeline_mode<synchronous>, transform_indices = @transform_4, window_bounds = array<i64: 1, 128>}, {pipeline_mode = #tpu.pipeline_mode<synchronous>, transform_indices = @transform_5, window_bounds = array<i64: 128, 128>}, {pipeline_mode = #tpu.pipeline_mode<synchronous>, transform_indices = @transform_6, window_bounds = array<i64: 1, 128>}, {transform_indices = @transform_7, window_bounds = array<i64: 16, 128>}]} {
    %c0 = arith.constant 0 : index
    %c0_0 = arith.constant 0 : index
    %0 = vector.load %arg1[%c0, %c0_0] : memref<16x128xbf16, #tpu.memory_space<vmem>>, vector<16x128xbf16>
    %c0_1 = arith.constant 0 : index
    %c0_2 = arith.constant 0 : index
    %1 = vector.load %arg3[%c0_1, %c0_2] : memref<128x128xbf16, #tpu.memory_space<vmem>>, vector<128x128xbf16>
    %cst = arith.constant dense<0.000000e+00> : vector<16x128xf32>
    %2 = tpu.matmul %0, %1, %cst {dimension_numbers = #tpu.dot_dimension_numbers<[1], [0], [0], [1], [0, 0, 1, 1], [], []>} : vector<16x128xbf16>, vector<128x128xbf16>, vector<16x128xf32> -> vector<16x128xf32>
    %c0_3 = arith.constant 0 : index
    %c0_4 = arith.constant 0 : index
    %3 = vector.load %arg2[%c0_3, %c0_4] : memref<16x1xf32, #tpu.memory_space<vmem>>, vector<16x1xf32>
    %c0_5 = arith.constant 0 : index
    %c0_6 = arith.constant 0 : index
    %4 = vector.load %arg4[%c0_5, %c0_6] : memref<1x128xf32, #tpu.memory_space<vmem>>, vector<1x128xf32>
    %5 = vector.broadcast %3 : vector<16x1xf32> to vector<16x128xf32>
    %6 = vector.broadcast %4 : vector<1x128xf32> to vector<16x128xf32>
    %7 = arith.mulf %5, %6 : vector<16x128xf32>
    %8 = arith.addf %2, %7 : vector<16x128xf32>
    %c0_7 = arith.constant 0 : index
    %c0_8 = arith.constant 0 : index
    %9 = vector.load %arg5[%c0_7, %c0_8] : memref<1x128xf32, #tpu.memory_space<vmem>>, vector<1x128xf32>
    %10 = vector.broadcast %9 : vector<1x128xf32> to vector<16x128xf32>
    %11 = arith.addf %8, %10 : vector<16x128xf32>
    %cst_9 = arith.constant 0.000000e+00 : f32
    %12 = vector.broadcast %cst_9 : f32 to vector<16x128xf32>
    %13 = arith.maximumf %11, %12 : vector<16x128xf32>
    %14 = arith.truncf %13 : vector<16x128xf32> to vector<16x128xbf16>
    %c0_10 = arith.constant 0 : index
    %c0_11 = arith.constant 0 : index
    %15 = vector.load %arg6[%c0_10, %c0_11] : memref<128x128xbf16, #tpu.memory_space<vmem>>, vector<128x128xbf16>
    %cst_12 = arith.constant dense<0.000000e+00> : vector<16x128xf32>
    %16 = tpu.matmul %14, %15, %cst_12 {dimension_numbers = #tpu.dot_dimension_numbers<[1], [0], [0], [1], [0, 0, 1, 1], [], []>} : vector<16x128xbf16>, vector<128x128xbf16>, vector<16x128xf32> -> vector<16x128xf32>
    %c0_13 = arith.constant 0 : index
    %c0_14 = arith.constant 0 : index
    %17 = vector.load %arg7[%c0_13, %c0_14] : memref<1x128xf32, #tpu.memory_space<vmem>>, vector<1x128xf32>
    %18 = vector.broadcast %17 : vector<1x128xf32> to vector<16x128xf32>
    %19 = arith.addf %16, %18 : vector<16x128xf32>
    %c0_15 = arith.constant 0 : index
    %c0_16 = arith.constant 0 : index
    %20 = vector.load %arg8[%c0_15, %c0_16] : memref<16x128xf32, #tpu.memory_space<vmem>>, vector<16x128xf32>
    tpu.vector_store %arg8[%c0_15, %c0_16], %19 {strides = array<i32>} : memref<16x128xf32, #tpu.memory_space<vmem>>, vector<16x128xf32>,
    return
  }
  func.func @transform_0(%arg0: i32) -> (i32, i32) {
    %c0_i32 = arith.constant 0 : i32
    %c0_i32_0 = arith.constant 0 : i32
    return %arg0, %c0_i32 : i32, i32
  }
  func.func @transform_1(%arg0: i32) -> (i32, i32) {
    %c0_i32 = arith.constant 0 : i32
    %c0_i32_0 = arith.constant 0 : i32
    return %arg0, %c0_i32 : i32, i32
  }
  func.func @transform_2(%arg0: i32) -> (i32, i32) {
    %c0_i32 = arith.constant 0 : i32
    %c0_i32_0 = arith.constant 0 : i32
    %c0_i32_1 = arith.constant 0 : i32
    return %c0_i32, %c0_i32_0 : i32, i32
  }
  func.func @transform_3(%arg0: i32) -> (i32, i32) {
    %c0_i32 = arith.constant 0 : i32
    %c0_i32_0 = arith.constant 0 : i32
    %c0_i32_1 = arith.constant 0 : i32
    return %c0_i32, %c0_i32_0 : i32, i32
  }
  func.func @transform_4(%arg0: i32) -> (i32, i32) {
    %c0_i32 = arith.constant 0 : i32
    %c0_i32_0 = arith.constant 0 : i32
    %c0_i32_1 = arith.constant 0 : i32
    return %c0_i32, %c0_i32_0 : i32, i32
  }
  func.func @transform_5(%arg0: i32) -> (i32, i32) {
    %c0_i32 = arith.constant 0 : i32
    %c0_i32_0 = arith.constant 0 : i32
    %c0_i32_1 = arith.constant 0 : i32
    return %c0_i32, %c0_i32_0 : i32, i32
  }
  func.func @transform_6(%arg0: i32) -> (i32, i32) {
    %c0_i32 = arith.constant 0 : i32
    %c0_i32_0 = arith.constant 0 : i32
    %c0_i32_1 = arith.constant 0 : i32
    return %c0_i32, %c0_i32_0 : i32, i32
  }
  func.func @transform_7(%arg0: i32) -> (i32, i32) {
    %c0_i32 = arith.constant 0 : i32
    %c0_i32_0 = arith.constant 0 : i32
    return %arg0, %c0_i32 : i32, i32
  }
}

</mosaic_0001>

<bundles_post_ra>
// kernel: tpu_custom_call.1
= control target key start
LH: loop header
LB: loop body
LE: loop exit
PB: predicated region body
PF: predicated region fallthrough
CT: control target
= control target key end

     0   :  { %12 = vsyncpa [#allocation3], 0  ;;  %s583_s0 = inlined_call_operand.vmem [shape: bf16[16,128], index: 0, kind: input, shape index: {}]   ;;  %s584_s1 = inlined_call_operand.vmem [shape: f32[16,1], index: 1, kind: input, shape index: {}]   ;;  %s585_s2 = inlined_call_operand.hbm [shape: bf16[128,128], index: 2, kind: input, shape index: {}]   ;;  %s586_s3 = inlined_call_operand.vmem [shape: f32[1,128], index: 3, kind: input, shape index: {}]   ;;  %s587_s4 = inlined_call_operand.vmem [shape: f32[1,128], index: 4, kind: input, shape index: {}]   ;;  %s588_s5 = inlined_call_operand.hbm [shape: bf16[128,128], index: 5, kind: input, shape index: {}]   ;;  %s589_s6 = inlined_call_operand.vmem [shape: f32[1,128], index: 6, kind: input, shape index: {}]   ;;  %s590_s7 = inlined_call_operand.hbm [shape: f32[16,128], index: 7, kind: output, shape index: {}]  }
   0x1   :  { %13 = vsyncpa [#allocation6], 0 }
   0x2   :  { %14 = vsyncpa [#allocation4], 0  ;;  %s506_s24 = smov [#allocation2]  }
   0x3   :  { %s24_s25 = sshll.u32 %s506_s24, 4  ;;  %s25_s25 = int_to_ptr.vmem [resolvable:$true] %s24_s25 }
   0x4   :  { %s448_s26 = scalar_lea.vmem %s25_s25, 1024  ;;  %p453_p1 = scmp.lt.s32.totalorder %s25_s25, %s25_s25 }
   0x5   :  { %p449_p0 = scmp.ne.s32.totalorder %s25_s25, %s448_s26  ;;  %p454_p2 = scmp.lt.s32.totalorder %s448_s26, %s448_s26 }
   0x7   :  { %p455_p3 = por %p454_p2, %p453_p1 }
   0x9   :  { %p456_p4 = pnand %p455_p3, %p449_p0 }
   0xb   :  { %459 = shalt.err (!%p456_p4)
}
   0xc   :  { %s507_s27 = smov 64   ;;  %s508_s28 = smov 4  }
   0xd   :  { %30 = dma.hbm_to_vmem [thread:$0]  %s585_s2, 1024, %s25_s25, [#allocation3], %s507_s27, %s507_s27, %s508_s28  }
   0xe   :  { %s509_s8 = smov [#allocation5]  }
   0xf   :  { %s40_s9 = sshll.u32 %s509_s8, 4  ;;  %s41_s9 = int_to_ptr.vmem [resolvable:$true] %s40_s9 }
  0x10   :  { %s468_s10 = scalar_lea.vmem %s41_s9, 1024  ;;  %p473_p6 = scmp.lt.s32.totalorder %s41_s9, %s41_s9 }
  0x11   :  { %p469_p5 = scmp.ne.s32.totalorder %s41_s9, %s468_s10  ;;  %p474_p7 = scmp.lt.s32.totalorder %s468_s10, %s468_s10 }
  0x13   :  { %p475_p8 = por %p474_p7, %p473_p6 }
  0x15   :  { %p476_p9 = pnand %p475_p8, %p469_p5 }
  0x17   :  { %479 = shalt.err (!%p476_p9)
}
  0x18   :  { %46 = dma.hbm_to_vmem [thread:$0]  %s588_s5, 1024, %s41_s9, [#allocation6], %s507_s27, %s507_s27, %s508_s28  }
  0x19   :  { %500 = dma.done.wait [#allocation3], 1024  }
  0x1a   :  { %501 = vsyncadd [#allocation3], 4294966272 }
  0x1b   :  { %502 = dma.done.wait [#allocation6], 1024  }
  0x1c   :  { %503 = vsyncadd [#allocation6], 4294966272  ;;  %v510_v0 = vmov 0.0   ;;  %vm511_vm0 = vmmov 0   ;;  %v512_v1 = vmov 0   ;;  %v423_v2 = vld [vmem:[#allocation2 + $0x38] sm:$0xff]  }
  0x1d   :  { %372 = vmatprep.subr.bf16.mxu0 %v510_v0  ;;  %388 = vmatprep.mubr.msk.bf16.mxu0 %vm511_vm0, %v510_v0  ;;  %v424_v3 = vld [vmem:[#allocation2 + $0x30] sm:$0xff]   ;;  %v425_v4 = vld [vmem:[#allocation2 + $0x28] sm:$0xff]   ;;  %v426_v5 = vld [vmem:[#allocation2 + $0x20] sm:$0xff]   ;;  %s513_s20 = smov [#allocation7]  }
  0x1e   :  { %422 = vset.pattern.permute.xlu0 %v512_v1  ;;  %392 = vmatprep.subr.bf16.mxu1 %v510_v0  ;;  %v74_v6 = vld [vmem:[%s584_s1] sm:$0xff]  ;;  %v432_v7 = vld [vmem:[#allocation5 + $0x38] sm:$0xff]   ;;  %v75_v8 = vld [vmem:[%s584_s1 + $0x8] sm:$0xff]  ;;  %s321_s21 = sshll.u32 %s513_s20, 4  ;;  %s322_s21 = int_to_ptr.vmem [resolvable:$true] %s321_s21 }
  0x1f   :  { %408 = vmatprep.mubr.msk.bf16.mxu1 %vm511_vm0, %v510_v0  ;;  %373 = vmatpush3.bf16.msra.mxu0 %v423_v2  ;;  %v433_v9 = vld [vmem:[#allocation5 + $0x30] sm:$0xff]   ;;  %v427_v10 = vld [vmem:[#allocation2 + $0x18] sm:$0xff]   ;;  %v434_v11 = vld [vmem:[#allocation5 + $0x28] sm:$0xff]   ;;  %p485_p11 = scmp.lt.s32.totalorder %s322_s21, %s322_s21 }
  0x20   :  { %374 = vmatprep.subr.bf16.mxu0 %v510_v0  ;;  %79 = vperm.xlu0 %422, %v74_v6   ;;  %v428_v12 = vld [vmem:[#allocation2 + $0x10] sm:$0xff]   ;;  %v435_v13 = vld [vmem:[#allocation5 + $0x20] sm:$0xff]   ;;  %v429_v14 = vld [vmem:[#allocation2 + $0x8] sm:$0xff]  }
  0x21   :  { %393 = vmatpush3.bf16.msra.mxu1 %v432_v7  ;;  %v436_v15 = vld [vmem:[#allocation5 + $0x18] sm:$0xff]   ;;  %v430_v16 = vld [vmem:[#allocation2] sm:$0xff]   ;;  %v437_v18 = vld [vmem:[#allocation5 + $0x10] sm:$0xff]  }
  0x22   :  { %394 = vmatprep.subr.bf16.mxu1 %v510_v0  ;;  %v431_v17 = vld [vmem:[%s583_s0] sm:$0xff]   ;;  %v438_v19 = vld [vmem:[#allocation5 + $0x8] sm:$0xff]  }
  0x23   :  { %375 = vmatpush3.bf16.msra.mxu0 %v424_v3  ;;  %v439_v20 = vld [vmem:[#allocation5] sm:$0xff]  }
  0x24   :  { %376 = vmatprep.subr.bf16.mxu0 %v510_v0  ;;  %84 = vperm.xlu0 %422, %v75_v8   ;;  %v334_v21 = vld [vmem:[%s586_s3] ss:$0 sm:$0xff] }
  0x25   :  { %395 = vmatpush3.bf16.msra.mxu1 %v433_v9  ;;  %v344_v27 = vld [vmem:[%s587_s4] ss:$0 sm:$0xff]  ;;  %s480_s4 = scalar_lea.vmem %s322_s21, 256 }
  0x26   :  { %396 = vmatprep.subr.bf16.mxu1 %v510_v0  ;;  %v345_v38 = vld [vmem:[%s589_s6] ss:$0 sm:$0xff]  ;;  %p481_p10 = scmp.ne.s32.totalorder %s322_s21, %s480_s4  ;;  %p486_p12 = scmp.lt.s32.totalorder %s480_s4, %s480_s4 }
  0x27   :  { %377 = vmatpush3.bf16.msra.mxu0 %v425_v4 }
  0x28   :  { %378 = vmatprep.subr.bf16.mxu0 %v510_v0  ;;  %p487_p13 = por %p486_p12, %p485_p11 }
  0x29   :  { %397 = vmatpush3.bf16.msra.mxu1 %v434_v11 }
  0x2a   :  { %398 = vmatprep.subr.bf16.mxu1 %v510_v0  ;;  %p488_p0 = pnand %p487_p13, %p481_p10 }
  0x2b   :  { %379 = vmatpush3.bf16.msra.mxu0 %v426_v5 }
  0x2c   :  { %380 = vmatprep.subr.bf16.mxu0 %v510_v0 }
  0x2d   :  { %399 = vmatpush3.bf16.msra.mxu1 %v435_v13 }
  0x2e   :  { %400 = vmatprep.subr.bf16.mxu1 %v510_v0 }
  0x2f   :  { %381 = vmatpush3.bf16.msra.mxu0 %v427_v10 }
  0x30   :  { %382 = vmatprep.subr.bf16.mxu0 %v510_v0 }
  0x31   :  { %401 = vmatpush3.bf16.msra.mxu1 %v436_v15 }
  0x32   :  { %402 = vmatprep.subr.bf16.mxu1 %v510_v0 }
  0x33   :  { %383 = vmatpush3.bf16.msra.mxu0 %v428_v12 }
  0x34   :  { %384 = vmatprep.subr.bf16.mxu0 %v510_v0 }
  0x35   :  { %403 = vmatpush3.bf16.msra.mxu1 %v437_v18 }
  0x36   :  { %404 = vmatprep.subr.bf16.mxu1 %v510_v0 }
  0x37   :  { %385 = vmatpush3.bf16.msra.mxu0 %v429_v14 }
  0x38   :  { %386 = vmatprep.subr.bf16.mxu0 %v510_v0 }
  0x39   :  { %405 = vmatpush3.bf16.msra.mxu1 %v438_v19 }
  0x3a   :  { %406 = vmatprep.subr.bf16.mxu1 %v510_v0 }
  0x3b   :  { %387 = vmatpush3.bf16.msra.mxu0 %v430_v16 }
  0x3d   :  { %407 = vmatpush3.bf16.msra.mxu1 %v439_v20 }
  0x3e   :  { %389 = vmatmul.mubr.bf16.vlgmr.msra.gmra.mxu0 %v431_v17 }
  0x9b   :  { %v80_v22 = vpop.permute.xlu0 %79 }
  0x9c   :  { %v93_v23 = vmul.f32 %v334_v21, %v80_v22 }
  0x9f   :  { %v85_v24 = vpop.permute.xlu0 %84 }
  0xa0   :  { %v94_v29 = vmul.f32 %v334_v21, %v85_v24 }
  0xfe   :  { %v183_v25 = vpop.f32.mrf.mxu0 }
  0xff   :  { %v184_v26 = vadd.f32 %v183_v25, %v93_v23 }
 0x100   :  { %v390_v28 = vpop.f32.mrf.mxu0 }
 0x101   :  { %v197_v31 = vadd.f32 %v344_v27, %v184_v26 }
 0x102   :  { %v186_v30 = vpop.f32.mrf.mxu0 }
 0x103   :  { %v187_v32 = vadd.f32 %v186_v30, %v94_v29  ;;  %v199_v35 = vmax.f32 %v197_v31, 0.0 }
 0x104   :  { %v391_v33 = vpop.f32.mrf.mxu0 }
 0x105   :  { %v198_v34 = vadd.f32 %v344_v27, %v187_v32 }
 0x107   :  { %v200_v36 = vmax.f32 %v198_v34, 0.0 }
 0x109   :  { %v201_v37 = vpack.c.bf16 %v200_v36, %v199_v35 }
 0x10b   :  { %409 = vmatmul.mubr.bf16.vlgmr.msra.gmra.mxu1 %v201_v37 }
 0x1cb   :  { %v307_v39 = vpop.f32.mrf.mxu1 }
 0x1cc   :  { %v308_v40 = vadd.f32 %v345_v38, %v307_v39 }
 0x1cd   :  { %v410_v41 = vpop.f32.mrf.mxu1 }
 0x1ce   :  { %314 = vst [vmem:[#allocation7] sm:$0xff] %v308_v40 }
 0x1cf   :  { %v310_v42 = vpop.f32.mrf.mxu1 }
 0x1d0   :  { %v311_v43 = vadd.f32 %v345_v38, %v310_v42 }
 0x1d1   :  { %v411_v44 = vpop.f32.mrf.mxu1 }
 0x1d2   :  { %315 = vst [vmem:[#allocation7 + $0x8] sm:$0xff] %v311_v43 }
 0x1d3   :  { %491 = shalt.err (!%p488_p0)
}
 0x1d4   :  { %s514_s22 = smov 128   ;;  %s515_s6 = smov 8  }
 0x1d5   :  { %327 = dma.vmem_to_hbm [thread:$0]  %s322_s21, 256, %s590_s7, [#allocation4], %s514_s22, %s514_s22, %s515_s6  }
 0x1d6   :  { %504 = dma.done.wait [#allocation4], 256  }
 0x1d7   :  { %505 = vsyncadd [#allocation4], 4294967040 }
 0x1d8   :  { %331 = vsyncpa [#allocation3], 1 }
 0x1d9   :  { %332 = vsyncpa [#allocation6], 1 }
 0x1da   :  { %333 = vsyncpa [#allocation4], 1 }

</bundles_post_ra>
